<compile_context>
chip_gen: v6e
topology: v6e:2x2x1
jax: 0.10.0
libtpu: 0.0.40
codegen_flags: <defaults>
</compile_context>

<pallas_src>
import functools

import jax
import jax.numpy as jnp
from jax.experimental import pallas as pl
from jax.experimental.pallas import tpu as pltpu


def _vmem_budget():
    """(vmem_limit_bytes, per-buffer tile target bytes), generation-aware."""
    try:
        cap = pltpu.get_tpu_info().vmem_capacity_bytes
    except Exception:
        cap = 128 * 1024 * 1024
    if cap <= 64 * 1024 * 1024:                 # v7x: 64 MiB physical per TC
        return 32 * 1024 * 1024, 4 * 1024 * 1024
    return 64 * 1024 * 1024, 12 * 1024 * 1024   # v5e / v6e: 128 MiB


def _row_align(dtype):
    """Sublane-packing alignment for the batch tile: 8 f32, 16 bf16, 32 int8."""
    itemsize = jnp.dtype(dtype).itemsize
    return 8 * max(1, 4 // itemsize)


def _choose_batch_tile(n, f, itemsize, target_bytes, align):
    """Largest batch tile (multiple of `align`, or full batch) within the byte target."""
    if n * f * itemsize <= target_bytes:
        return n
    rows = max(1, target_bytes // max(1, f * itemsize))
    if rows >= n:
        return n
    rows = max(align, (rows // align) * align)
    return min(rows, n)


def _choose_feature_tile(f):
    """Split F into two lane-dense halves when possible so the 'parallel'
    feature axis of the stats grid can be sharded over v7x's 2 TensorCores
    (harmless on single-TC v5e/v6e: total HBM traffic is unchanged)."""
    if f >= 256 and f % 256 == 0:
        return f // 2
    return f


# ----------------------------------------------------------------------------
# Fused stats kernel: single pass over x -> (loc, inv_scale).
# grid = (F_blocks, N_blocks); the batch (reduction) axis is last / "arbitrary".
# loc_ref holds the running mean, inv_ref holds the running M2; both (1, TF)
# output blocks are resident across the reduction axis.
# ----------------------------------------------------------------------------
def _stats_kernel(x_ref, loc_ref, inv_ref, *, n_total, tn):
    k = pl.program_id(1)
    last = pl.num_programs(1) - 1
    n_a = (k * tn).astype(jnp.float32)          # rows already merged (prior blocks are full)

    @pl.when(k == 0)
    def _():
        loc_ref[...] = jnp.zeros_like(loc_ref)
        inv_ref[...] = jnp.zeros_like(inv_ref)

    def combine(x, n_b, mask=None):
        # Chan / Welford pairwise merge of this block's (mean_b, M2_b) into
        # the running (mean, M2) accumulators.
        sum_b = jnp.sum(x, axis=0, keepdims=True)
        mean_b = sum_b * (1.0 / n_b)
        d = x - mean_b
        if mask is not None:
            d = jnp.where(mask, d, 0.0)
        m2_b = jnp.sum(d * d, axis=0, keepdims=True)
        n_ab = n_a + n_b
        w = n_b / n_ab                           # n_ab >= 1 always
        delta = mean_b - loc_ref[...]
        loc_ref[...] = loc_ref[...] + delta * w
        inv_ref[...] = inv_ref[...] + m2_b + (delta * delta) * (n_a * w)

    rem = n_total % tn
    if rem == 0:
        combine(x_ref[...].astype(jnp.float32), float(tn))
    else:
        # Ragged edge: pay the mask only on the last grid step.
        @pl.when(k != last)
        def _():
            combine(x_ref[...].astype(jnp.float32), float(tn))

        @pl.when(k == last)
        def _():
            x = x_ref[...].astype(jnp.float32)
            row = jax.lax.broadcasted_iota(jnp.int32, (x.shape[0], 1), 0)
            mask = row < rem
            combine(jnp.where(mask, x, 0.0), float(rem), mask=mask)

    @pl.when(k == last)
    def _():
        denom = float(max(n_total - 1, 1))       # torch.std default: ddof = 1
        var = inv_ref[...] * (1.0 / denom)
        # scale[~(scale > 0)] = 1 ; inv_scale = scale.reciprocal()
        inv_ref[...] = jnp.where(var > 0.0, jax.lax.rsqrt(var), 1.0)


def compute_prewhitener_params(x2d):
    """x2d: (N, F). Returns loc (1, F) f32, inv_scale (1, F) f32."""
    n, f = x2d.shape
    vmem_limit, tile_target = _vmem_budget()
    itemsize = jnp.dtype(x2d.dtype).itemsize
    tf = _choose_feature_tile(f)
    tn = _choose_batch_tile(n, tf, itemsize, tile_target, _row_align(x2d.dtype))
    grid = (f // tf, pl.cdiv(n, tn))

    cost = pl.CostEstimate(
        flops=6 * n * f,
        transcendentals=f,
        bytes_accessed=n * f * itemsize + 2 * f * 4)

    loc, inv_scale = pl.pallas_call(
        functools.partial(_stats_kernel, n_total=n, tn=tn),
        out_shape=(jax.ShapeDtypeStruct((1, f), jnp.float32),
                   jax.ShapeDtypeStruct((1, f), jnp.float32)),
        grid_spec=pltpu.PrefetchScalarGridSpec(
            num_scalar_prefetch=0,
            grid=grid,
            in_specs=[pl.BlockSpec((tn, tf), lambda j, k: (k, j))],
            out_specs=[pl.BlockSpec((1, tf), lambda j, k: (0, j)),
                       pl.BlockSpec((1, tf), lambda j, k: (0, j))],
        ),
        compiler_params=pltpu.CompilerParams(
            dimension_semantics=("parallel", "arbitrary"),
            vmem_limit_bytes=vmem_limit),
        cost_estimate=cost,
    )(x2d)
    return loc, inv_scale


# ----------------------------------------------------------------------------
# Forward pass:  (data - loc) * inv_scale   (elementwise, HBM-bandwidth bound).
# ----------------------------------------------------------------------------
def _whiten_kernel(x_ref, loc_ref, inv_ref, o_ref):
    x = x_ref[...].astype(jnp.float32)
    o_ref[...] = ((x - loc_ref[...]) * inv_ref[...]).astype(o_ref.dtype)


def prewhiten(x2d, loc, inv_scale, out_dtype=None):
    n, f = x2d.shape
    if out_dtype is None:
        # Keep the input dtype on the hot path (halves write bytes for bf16);
        # integer inputs promote to f32.  f32 math happens inside the kernel.
        out_dtype = x2d.dtype if jnp.issubdtype(x2d.dtype, jnp.floating) else jnp.float32
    vmem_limit, tile_target = _vmem_budget()
    itemsize = max(jnp.dtype(x2d.dtype).itemsize, jnp.dtype(out_dtype).itemsize)
    tn = _choose_batch_tile(n, f, itemsize, tile_target, _row_align(x2d.dtype))

    cost = pl.CostEstimate(
        flops=2 * n * f,
        transcendentals=0,
        bytes_accessed=(n * f * jnp.dtype(x2d.dtype).itemsize
                        + 2 * f * 4
                        + n * f * jnp.dtype(out_dtype).itemsize))

    return pl.pallas_call(
        _whiten_kernel,
        out_shape=jax.ShapeDtypeStruct((n, f), out_dtype),
        grid_spec=pltpu.PrefetchScalarGridSpec(
            num_scalar_prefetch=0,
            grid=(pl.cdiv(n, tn),),
            in_specs=[
                pl.BlockSpec((tn, f), lambda i: (i, 0)),
                pl.BlockSpec((1, f), lambda i: (0, 0)),   # resident, DMA'd once
                pl.BlockSpec((1, f), lambda i: (0, 0)),   # resident, DMA'd once
            ],
            out_specs=pl.BlockSpec((tn, f), lambda i: (i, 0)),
        ),
        compiler_params=pltpu.CompilerParams(
            dimension_semantics=("parallel",),
            vmem_limit_bytes=vmem_limit),
        cost_estimate=cost,
    )(x2d, loc, inv_scale)


# ----------------------------------------------------------------------------
# Wrapper mirroring the PyTorch module semantics on NCHW (or any (N, ...)) data.
# ----------------------------------------------------------------------------
class PreWhitenerPallas:
    def __init__(self, data, store_mu_std=False):
        n = data.shape[0]
        self._feat_shape = tuple(int(d) for d in data.shape[1:])
        f = 1
        for d in self._feat_shape:
            f *= d
        x2d = data.reshape(n, f)                    # no host-side f32 cast
        loc, inv_scale = compute_prewhitener_params(x2d)
        self.loc = loc                              # (1, F) float32
        self.inv_scale = inv_scale                  # (1, F) float32
        if store_mu_std:
            # torch path calls .item(): only meaningful for single-feature data.
            self.mean = float(loc.reshape(-1)[0])
            self.std = float(1.0 / inv_scale.reshape(-1)[0])

    def __call__(self, data):
        n = data.shape[0]
        f = self.loc.shape[1]
        x2d = data.reshape(n, f)                    # upcast happens in-kernel
        out2d = prewhiten(x2d, self.loc, self.inv_scale)
        return out2d.reshape((n,) + self._feat_shape)


def _reference(data):
    # pure-JAX reference of the PyTorch semantics
    x = data.astype(jnp.float32)
    loc = x.mean(axis=0)
    std = x.std(axis=0, ddof=1)
    inv = jnp.where(std > 0.0, 1.0 / std, 1.0)
    return (x - loc) * inv


if __name__ == "__main__":
    key = jax.random.PRNGKey(0)
    # small NCHW batch: (N, C, H, W) = (16, 4, 16, 16) -> F = 1024
    x = jax.random.normal(key, (16, 4, 16, 16), dtype=jnp.float32) * 3.0 + 1.5
    # make one feature constant to exercise the std == 0 -> scale = 1 fixup
    x = x.at[:, 0, 0, 0].set(2.5)

    whitener = PreWhitenerPallas(x)
    out = jax.block_until_ready(whitener(x))

    ref = _reference(x)
    assert out.shape == x.shape
    assert out.dtype == x.dtype
    assert jnp.allclose(out.astype(jnp.float32), ref, atol=1e-4, rtol=1e-4)
    print("KERNEL_OK")
</pallas_src>

<mosaic_0001>
module attributes {stable_mosaic.version = 11 : i64} {
  func.func @_stats_kernel(%arg0: i32, %arg1: i32, %arg2: memref<16x512xf32, #tpu.memory_space<vmem>>, %arg3: memref<1x512xf32, #tpu.memory_space<vmem>>, %arg4: memref<1x512xf32, #tpu.memory_space<vmem>>) attributes {dimension_semantics = [#tpu.dimension_semantics<parallel>, #tpu.dimension_semantics<arbitrary>], iteration_bounds = array<i64: 2, 1>, scalar_prefetch = 0 : i64, scratch_operands = 0 : i64, tpu.core_type = #tpu.core_type<tc>, window_params = [{transform_indices = @transform_0, window_bounds = array<i64: 16, 512>}, {transform_indices = @transform_1, window_bounds = array<i64: 1, 512>}, {transform_indices = @transform_2, window_bounds = array<i64: 1, 512>}]} {
    %c16_i32 = arith.constant 16 : i32
    %0 = arith.muli %arg1, %c16_i32 : i32
    %1 = arith.sitofp %0 : i32 to f32
    %c0_i32 = arith.constant 0 : i32
    %2 = arith.cmpi eq, %arg1, %c0_i32 : i32
    %3 = arith.extui %2 : i1 to i32
    %c0_i32_0 = arith.constant 0 : i32
    %4 = arith.cmpi ne, %3, %c0_i32_0 : i32
    scf.if %4 {
      %cst_18 = arith.constant 0.000000e+00 : f32
      %35 = vector.broadcast %cst_18 : f32 to vector<1x512xf32>
      %c0_19 = arith.constant 0 : index
      %c0_20 = arith.constant 0 : index
      %36 = vector.load %arg3[%c0_19, %c0_20] : memref<1x512xf32, #tpu.memory_space<vmem>>, vector<1x512xf32>
      tpu.vector_store %arg3[%c0_19, %c0_20], %35 {strides = array<i32>} : memref<1x512xf32, #tpu.memory_space<vmem>>, vector<1x512xf32>,
      %cst_21 = arith.constant 0.000000e+00 : f32
      %37 = vector.broadcast %cst_21 : f32 to vector<1x512xf32>
      %c0_22 = arith.constant 0 : index
      %c0_23 = arith.constant 0 : index
      %38 = vector.load %arg4[%c0_22, %c0_23] : memref<1x512xf32, #tpu.memory_space<vmem>>, vector<1x512xf32>
      tpu.vector_store %arg4[%c0_22, %c0_23], %37 {strides = array<i32>} : memref<1x512xf32, #tpu.memory_space<vmem>>, vector<1x512xf32>,
    } else {
    }
    %c0 = arith.constant 0 : index
    %c0_1 = arith.constant 0 : index
    %5 = vector.load %arg2[%c0, %c0_1] : memref<16x512xf32, #tpu.memory_space<vmem>>, vector<16x512xf32>
    %cst = arith.constant dense<0.000000e+00> : vector<512xf32>
    %6 = vector.multi_reduction <add>, %5, %cst [0] : vector<16x512xf32> to vector<512xf32>
    %7 = vector.shape_cast %6 : vector<512xf32> to vector<1x512xf32>
    %cst_2 = arith.constant 6.250000e-02 : f32
    %8 = vector.broadcast %cst_2 : f32 to vector<1x512xf32>
    %9 = arith.mulf %7, %8 : vector<1x512xf32>
    %10 = vector.broadcast %9 : vector<1x512xf32> to vector<16x512xf32>
    %11 = arith.subf %5, %10 : vector<16x512xf32>
    %12 = arith.mulf %11, %11 : vector<16x512xf32>
    %cst_3 = arith.constant dense<0.000000e+00> : vector<512xf32>
    %13 = vector.multi_reduction <add>, %12, %cst_3 [0] : vector<16x512xf32> to vector<512xf32>
    %14 = vector.shape_cast %13 : vector<512xf32> to vector<1x512xf32>
    %cst_4 = arith.constant 1.600000e+01 : f32
    %15 = arith.addf %1, %cst_4 : f32
    %cst_5 = arith.constant 1.600000e+01 : f32
    %16 = arith.divf %cst_5, %15 : f32
    %c0_6 = arith.constant 0 : index
    %c0_7 = arith.constant 0 : index
    %17 = vector.load %arg3[%c0_6, %c0_7] : memref<1x512xf32, #tpu.memory_space<vmem>>, vector<1x512xf32>
    %18 = arith.subf %9, %17 : vector<1x512xf32>
    %c0_8 = arith.constant 0 : index
    %c0_9 = arith.constant 0 : index
    %19 = vector.load %arg3[%c0_8, %c0_9] : memref<1x512xf32, #tpu.memory_space<vmem>>, vector<1x512xf32>
    %20 = vector.broadcast %16 : f32 to vector<1x512xf32>
    %21 = arith.mulf %18, %20 : vector<1x512xf32>
    %22 = arith.addf %19, %21 : vector<1x512xf32>
    %c0_10 = arith.constant 0 : index
    %c0_11 = arith.constant 0 : index
    %23 = vector.load %arg3[%c0_10, %c0_11] : memref<1x512xf32, #tpu.memory_space<vmem>>, vector<1x512xf32>
    tpu.vector_store %arg3[%c0_10, %c0_11], %22 {strides = array<i32>} : memref<1x512xf32, #tpu.memory_space<vmem>>, vector<1x512xf32>,
    %c0_12 = arith.constant 0 : index
    %c0_13 = arith.constant 0 : index
    %24 = vector.load %arg4[%c0_12, %c0_13] : memref<1x512xf32, #tpu.memory_space<vmem>>, vector<1x512xf32>
    %25 = arith.addf %24, %14 : vector<1x512xf32>
    %26 = arith.mulf %18, %18 : vector<1x512xf32>
    %27 = arith.mulf %1, %16 : f32
    %28 = vector.broadcast %27 : f32 to vector<1x512xf32>
    %29 = arith.mulf %26, %28 : vector<1x512xf32>
    %30 = arith.addf %25, %29 : vector<1x512xf32>
    %c0_14 = arith.constant 0 : index
    %c0_15 = arith.constant 0 : index
    %31 = vector.load %arg4[%c0_14, %c0_15] : memref<1x512xf32, #tpu.memory_space<vmem>>, vector<1x512xf32>
    tpu.vector_store %arg4[%c0_14, %c0_15], %30 {strides = array<i32>} : memref<1x512xf32, #tpu.memory_space<vmem>>, vector<1x512xf32>,
    %c0_i32_16 = arith.constant 0 : i32
    %32 = arith.cmpi eq, %arg1, %c0_i32_16 : i32
    %33 = arith.extui %32 : i1 to i32
    %c0_i32_17 = arith.constant 0 : i32
    %34 = arith.cmpi ne, %33, %c0_i32_17 : i32
    scf.if %34 {
      %c0_18 = arith.constant 0 : index
      %c0_19 = arith.constant 0 : index
      %35 = vector.load %arg4[%c0_18, %c0_19] : memref<1x512xf32, #tpu.memory_space<vmem>>, vector<1x512xf32>
      %cst_20 = arith.constant 0.0666666701 : f32
      %36 = vector.broadcast %cst_20 : f32 to vector<1x512xf32>
      %37 = arith.mulf %35, %36 : vector<1x512xf32>
      %cst_21 = arith.constant 0.000000e+00 : f32
      %38 = vector.broadcast %cst_21 : f32 to vector<1x512xf32>
      %39 = arith.cmpf ogt, %37, %38 : vector<1x512xf32>
      %40 = math.rsqrt %37 : vector<1x512xf32>
      %cst_22 = arith.constant 1.000000e+00 : f32
      %41 = vector.broadcast %cst_22 : f32 to vector<1x512xf32>
      %42 = arith.select %39, %40, %41 : vector<1x512xi1>, vector<1x512xf32>
      %c0_23 = arith.constant 0 : index
      %c0_24 = arith.constant 0 : index
      %43 = vector.load %arg4[%c0_23, %c0_24] : memref<1x512xf32, #tpu.memory_space<vmem>>, vector<1x512xf32>
      tpu.vector_store %arg4[%c0_23, %c0_24], %42 {strides = array<i32>} : memref<1x512xf32, #tpu.memory_space<vmem>>, vector<1x512xf32>,
    } else {
    }
    return
  }
  func.func @transform_0(%arg0: i32, %arg1: i32) -> (i32, i32) {
    %c0_i32 = arith.constant 0 : i32
    return %arg1, %arg0 : i32, i32
  }
  func.func @transform_1(%arg0: i32, %arg1: i32) -> (i32, i32) {
    %c0_i32 = arith.constant 0 : i32
    %c0_i32_0 = arith.constant 0 : i32
    return %c0_i32, %arg0 : i32, i32
  }
  func.func @transform_2(%arg0: i32, %arg1: i32) -> (i32, i32) {
    %c0_i32 = arith.constant 0 : i32
    %c0_i32_0 = arith.constant 0 : i32
    return %c0_i32, %arg0 : i32, i32
  }
}

</mosaic_0001>

<bundles_post_ra>
// kernel: tpu_custom_call.1
= control target key start
LH: loop header
LB: loop body
LE: loop exit
PB: predicated region body
PF: predicated region fallthrough
CT: control target
= control target key end

     0   :  { %8 = vsyncpa [#allocation3], 0  ;;  %s1063_s0 = inlined_call_operand.hbm [shape: f32[16,1024], index: 0, kind: input, shape index: {}]   ;;  %s1064_s1 = inlined_call_operand.hbm [shape: f32[1,1024], index: 1, kind: output, shape index: {0}]   ;;  %s1065_s2 = inlined_call_operand.hbm [shape: f32[1,1024], index: 2, kind: output, shape index: {1}]  }
   0x1   :  { %10 = vsyncpa [#allocation3 + $0x1], 0 }
   0x2   :  { %11 = vsyncpa [#allocation4], 0 }
   0x3   :  { %13 = vsyncpa [#allocation4 + $0x1], 0 }
   0x4   :  { %14 = vsyncpa [#allocation7], 0 }
   0x5   :  { %16 = vsyncpa [#allocation7 + $0x1], 0  ;;  %s848_s9 = smov 0   ;;  %s850_s10 = smov 0  }
   0x6   :  { %s852_s11 = smov 0   ;;  %s854_s12 = smov 0  }
   0x7   :  { %s856_s13 = smov 0   ;;  %s858_s14 = smov 0  }
   0x8 LB: > { %s589_s15 = sadd.s32 4294967295, %s823_s14   ;;  %s590_s16 = sadd.s32 4294967294, %s823_s14   ;;  %s823_s14 = sphi %s858_s14, %s22_s14   ;;  %s819_s13 = sphi %s856_s13, %s1078_s13   ;;  %s815_s12 = sphi %s854_s12, %s1077_s12   ;;  %s811_s11 = sphi %s852_s11, %s1076_s11   ;;  %s807_s10 = sphi %s850_s10, %s1075_s10   ;;  %s803_s9 = sphi %s848_s9, %s1074_s9  }
   0x9   : > { %s34_s17 = sadd.s32 1, %s819_s13  ;;  %s43_s18 = sadd.s32 1, %s811_s11 }
   0xa   : > { %p36_p0 = scmp.ge.s32.totalorder %s34_s17, 2  ;;  %p50_p1 = scmp.ne.s32.totalorder %s811_s11, %s807_s10 }
   0xb   : > { %p51_p2 = scmp.eq.s32.totalorder %s823_s14, 0  ;;  %p56_p3 = scmp.ne.s32.totalorder %s807_s10, %s803_s9 }
   0xc   : > { %s1080_s17 = smov (%p36_p0, %s34_s17), 0  ;;  %p57_p5 = scmp.eq.s32.totalorder %s589_s15, 0 }
   0xd   : > { %p889_p4 = por %p51_p2, %p50_p1  ;;  %s39_s20 = ssub.s32 %s819_s13, %s1080_s17 }
   0xe   : > { %p80_p6 = scmp.eq.s32.totalorder %s589_s15, 1  ;;  %p41_p7 = scmp.eq.s32.totalorder %s39_s20, 0 }
   0xf   : > { %p895_p8 = por %p57_p5, %p56_p3  ;;  %p86_p10 = scmp.eq.s32.totalorder %s590_s16, 1 }
  0x10   : > { %p899_p9 = por %p80_p6, %p50_p1  ;;  %p628_p13 = scmp.lt.s32.totalorder %s823_s14, 2 }
  0x11   : > { %s904_s23 = scalar_select %p41_p7, %s811_s11, %s43_s18  }
  0x12   : > { %p906_p11 = por %p86_p10, %p56_p3  ;;  %s132_s25 = sand.u32 1, %s811_s11  }
  0x13   : > { %s593_s26 = sshll.u32 %s132_s25, 6  ;;  %s608_s27 = sshll.u32 %s819_s13, 9 }
  0x14   : > { %s145_s30 = scalar_lea.hbm %s1063_s0, %s608_s27  ;;  %s136_s3 = scalar_lea.vmem [#allocation2], %s593_s26 }
  0x15   : > { %s146_s4 = sshll.u32 %s136_s3, 4  ;;  %p919_p0 = pnand %p628_p13, %p889_p4  ;;  %s147_s4 = int_to_ptr.vmem [resolvable:$true] %s146_s4 }
  0x16   : > { %s133_s6 = scalar_lea.sflag [#allocation3], %s132_s25  ;;  %s698_s7 = scalar_lea.vmem %s147_s4, 1024 }
  0x17   : > { %p687_p1 = pneg %p919_p0  ;;  %p699_p2 = scmp.ne.s32.totalorder %s147_s4, %s698_s7 }
  0x18   : > { %s825_s8 = smov [#allocation2]  }
  0x19   : > { %p701_p3 = pnand %p699_p2, %p687_p1  ;;  %s703_s15 = sshll.u32 %s825_s8, 4  ;;  %s704_s15 = int_to_ptr.vmem [resolvable:$false] %s703_s15 }
  0x1a   : > { %s705_s16 = scalar_lea.vmem %s704_s15, 2048  ;;  %p706_p6 = scmp.lt.s32.totalorder %s147_s4, %s704_s15 }
  0x1b   : > { %p702_p5 = pneg %p701_p3  ;;  %p707_p7 = scmp.lt.s32.totalorder %s705_s16, %s698_s7 }
  0x1d   : > { %p708_p10 = por %p707_p7, %p706_p6 }
  0x1f   : > { %p709_p12 = pnand %p708_p10, %p702_p5 }
  0x21   : > { %712 = shalt.err (!%p709_p12)
}
  0x22   : > { %s826_s18 = smov 1024   ;;  %s827_s19 = smov 512  }
  0x23   : > { %s828_s20 = smov 32   ;;  %p596_p4 = scmp.ge.s32.totalorder %s823_s14, 1 }
  0x24   : > { %620 = dma.hbm_to_vmem [thread:$0]  (!%p919_p0), %s145_s30, 1024, %s147_s4, %s133_s6, %s826_s18, %s827_s19, %s828_s20  }
  0x25   : > { %p154_p13 = scmp.lt.s32.totalorder %s823_s14, 3 }
  0x27   : > { %p155_p1 = pnand %p596_p4, %p154_p13 }
  0x28   : > { %s930_s25 = sand.u32 (!%p155_p1), 1, %s807_s10  }
  0x29   : > { %158 = sbr.rel (%p155_p1) target bundleno = 148 (0x94), region = 24  ;;  %s597_s26 = sshll.u32 (!%p155_p1), %s930_s25, 6 }
  0x2a   : > { %s161_s27 = scalar_lea.sflag (!%p155_p1), [#allocation3], %s930_s25  ;;  %s164_s28 = scalar_lea.vmem (!%p155_p1), [#allocation2], %s597_s26 }
  0x2e   : > { %790 = dma.done.wait (%p895_p8), %s161_s27, 1024  }
  0x2f   : > { %792 = vsyncadd (%p895_p8), %s161_s27, 4294966272  ;;  %s598_s29 = sshll.u32 %s930_s25, 2  ;;  %v200_v0 = vlaneseq  ;;  %v829_v2 = vmov 0.0   ;;  %v206_v3 = vld [vmem:[%s164_s28] sm:$0xff]  ;;  %v207_v4 = vld [vmem:[%s164_s28 + $0x8] sm:$0xff]  ;;  %s609_s21 = sshll.u32 %s815_s12, 6 }
  0x30   : > { %s943_s30 = scalar_lea.vmem [#allocation5], %s598_s29  ;;  %s948_s3 = scalar_lea.vmem [#allocation6], %s598_s29  ;;  %v208_v5 = vld [vmem:[%s164_s28 + $0x10] sm:$0xff]  ;;  %v209_v6 = vld [vmem:[%s164_s28 + $0x18] sm:$0xff]  ;;  %v210_v7 = vld [vmem:[%s164_s28 + $0x20] sm:$0xff] }
  0x31   : > { %vm939_vm0 = vcmp.lt.s32.totalorder %v200_v0, 512  ;;  %v211_v8 = vld [vmem:[%s164_s28 + $0x28] sm:$0xff]  ;;  %v212_v9 = vld [vmem:[%s164_s28 + $0x30] sm:$0xff]  ;;  %v213_v10 = vld [vmem:[%s164_s28 + $0x38] sm:$0xff]  ;;  %v214_v11 = vadd.f32 %v210_v7, %v206_v3  ;;  %v830_v23 = vmov 1966171168   ;;  %s973_s7 = scalar_lea.hbm %s1064_s1, %s609_s21 }
  0x32   : > { %204 = vst.msk [vmem:[%s943_s30] sm:$0xf] %vm939_vm0, %v829_v2  ;;  %205 = vst.msk [vmem:[%s948_s3] sm:$0xf] %vm939_vm0, %v829_v2  ;;  %v221_v12 = vadd.f32 %v211_v8, %v207_v4  ;;  %v228_v13 = vadd.f32 %v212_v9, %v208_v5  ;;  %v235_v14 = vadd.f32 %v213_v10, %v209_v6  ;;  %v333_v24 = vunpack.c.l.s4 %v830_v23  ;;  %s462_s4 = sshll.u32 %s943_s30, 4  ;;  %s443_s8 = scalar_lea.sflag [#allocation4], %s930_s25  ;;  %s975_s4 = int_to_ptr.vmem [resolvable:$true] %s462_s4 }
  0x33   : > { %v215_v15 = vrot.slane %v214_v11, 4  ;;  %v298_v27 = vshrl.u32 %v200_v0, 7  ;;  %s713_s15 = scalar_lea.vmem %s975_s4, 64  ;;  %s831_s16 = smov [#allocation5]  }
  0x34   : > { %v222_v16 = vrot.slane %v221_v12, 4  ;;  %v229_v17 = vrot.slane %v228_v13, 4  ;;  %v236_v18 = vrot.slane %v235_v14, 4  ;;  %v334_v34 = vunpack.c.0.s8 %v333_v24  ;;  %p714_p8 = scmp.ne.s32.totalorder %s975_s4, %s713_s15  ;;  %s717_s18 = sshll.u32 %s831_s16, 4  ;;  %s718_s18 = int_to_ptr.vmem [resolvable:$false] %s717_s18 }
  0x35   : > { %v216_v19 = vadd.f32 %v215_v15, %v214_v11  ;;  %v299_v37 = vsub.s32 0, %v298_v27  ;;  %v303_v38 = vsub.s32 1, %v298_v27  ;;  %v307_v42 = vsub.s32 2, %v298_v27  ;;  %s719_s19 = scalar_lea.vmem %s718_s18, 128  ;;  %p720_p2 = scmp.lt.s32.totalorder %s975_s4, %s718_s18 }
  0x36   : > { %v223_v20 = vadd.f32 %v222_v16, %v221_v12  ;;  %v230_v21 = vadd.f32 %v229_v17, %v228_v13  ;;  %v237_v22 = vadd.f32 %v236_v18, %v235_v14  ;;  %v311_v43 = vsub.s32 3, %v298_v27  ;;  %p715_p12 = pnand %p714_p8, %p899_p9  ;;  %p721_p3 = scmp.lt.s32.totalorder %s719_s19, %s713_s15 }
  0x37   : > { %v217_v25 = vrot.slane %v216_v19, 2  ;;  %v956_v48 = vsub.s32 %v334_v34, %v298_v27 }
  0x38   : > { %v224_v26 = vrot.slane %v223_v20, 2  ;;  %v231_v28 = vrot.slane %v230_v21, 2  ;;  %v238_v29 = vrot.slane %v237_v22, 2  ;;  %p716_p0 = pneg %p715_p12  ;;  %p722_p5 = por %p721_p3, %p720_p2 }
  0x39   : > { %v218_v30 = vadd.f32 %v217_v25, %v216_v19  ;;  %v954_v41 = vld [vmem:[%s943_s30] sm:$0xf] }
  0x3a   : > { %v225_v31 = vadd.f32 %v224_v26, %v223_v20  ;;  %v232_v32 = vadd.f32 %v231_v28, %v230_v21  ;;  %v239_v33 = vadd.f32 %v238_v29, %v237_v22  ;;  %v300_v51 = vrot.slane %v954_v41, %v299_v37  ;;  %p723_p6 = pnand %p722_p5, %p716_p0 }
  0x3b   : > { %v219_v35 = vrot.slane %v218_v30, 1  ;;  %v304_v52 = vrot.slane %v954_v41, %v303_v38  ;;  %v308_v55 = vrot.slane %v954_v41, %v307_v42  ;;  %v312_v56 = vrot.slane %v954_v41, %v311_v43 }
  0x3c   : > { %v226_v36 = vrot.slane %v225_v31, 1  ;;  %v233_v39 = vrot.slane %v232_v32, 1  ;;  %v240_v40 = vrot.slane %v239_v33, 1 }
  0x3d   : > { %v220_v44 = vadd.f32 %v219_v35, %v218_v30 }
  0x3e   : > { %v227_v45 = vadd.f32 %v226_v36, %v225_v31  ;;  %v234_v46 = vadd.f32 %v233_v39, %v232_v32  ;;  %v241_v47 = vadd.f32 %v240_v40, %v239_v33 }
  0x3f   : > { %v242_v49 = vmul.f32 0.0625, %v220_v44 }
  0x40   : > { %v243_v50 = vmul.f32 0.0625, %v227_v45  ;;  %v244_v53 = vmul.f32 0.0625, %v234_v46  ;;  %v245_v54 = vmul.f32 0.0625, %v241_v47 }
  0x41   : > { %v246_v57 = vsub.f32 %v206_v3, %v242_v49  ;;  %v250_v59 = vsub.f32 %v210_v7, %v242_v49  ;;  %v317_v18 = vsub.f32 %v242_v49, %v300_v51 }
  0x42   : > { %v247_v58 = vsub.f32 %v207_v4, %v243_v50  ;;  %v251_v60 = vsub.f32 %v211_v8, %v243_v50  ;;  %v248_v61 = vsub.f32 %v208_v5, %v244_v53  ;;  %v249_v62 = vsub.f32 %v209_v6, %v245_v54 }
  0x43   : > { %v252_v63 = vsub.f32 %v212_v9, %v244_v53  ;;  %v253_v0 = vsub.f32 %v213_v10, %v245_v54  ;;  %v254_v2 = vmul.f32 %v246_v57, %v246_v57  ;;  %v258_v12 = vmul.f32 %v250_v59, %v250_v59 }
  0x44   : > { %v255_v11 = vmul.f32 %v247_v58, %v247_v58  ;;  %v259_v13 = vmul.f32 %v251_v60, %v251_v60  ;;  %v256_v14 = vmul.f32 %v248_v61, %v248_v61  ;;  %v257_v15 = vmul.f32 %v249_v62, %v249_v62 }
  0x45   : > { %v260_v16 = vmul.f32 %v252_v63, %v252_v63  ;;  %v261_v17 = vmul.f32 %v253_v0, %v253_v0  ;;  %v318_v19 = vsub.f32 %v243_v50, %v304_v52  ;;  %v319_v20 = vsub.f32 %v244_v53, %v308_v55 }
  0x46   : > { %v320_v21 = vsub.f32 %v245_v54, %v312_v56  ;;  %v262_v3 = vadd.f32 %v258_v12, %v254_v2  ;;  %v269_v4 = vadd.f32 %v259_v13, %v255_v11  ;;  %v392_v6 = vmul.f32 %v317_v18, %v317_v18 }
  0x47   : > { %v276_v7 = vadd.f32 %v260_v16, %v256_v14  ;;  %v330_v8 = vcombine.low %v317_v18, %v318_v19  ;;  %v283_v9 = vadd.f32 %v261_v17, %v257_v15  ;;  %v393_v10 = vmul.f32 %v318_v19, %v318_v19 }
  0x48   : > { %v331_v5 = vcombine.low %v319_v20, %v320_v21  ;;  %v394_v22 = vmul.f32 %v319_v20, %v319_v20  ;;  %v263_v23 = vrot.slane %v262_v3, 4  ;;  %v270_v24 = vrot.slane %v269_v4, 4 }
  0x49   : > { %v338_v25 = vrot.slane %v330_v8, %v956_v48  ;;  %v395_v27 = vmul.f32 %v320_v21, %v320_v21  ;;  %v398_v31 = vmul.f32 0.0, %v392_v6  ;;  %v277_v32 = vrot.slane %v276_v7, 4 }
  0x4a   : > { %v345_v26 = vrot.slane %v331_v5, %v956_v48  ;;  %v264_v28 = vadd.f32 %v263_v23, %v262_v3  ;;  %v271_v29 = vadd.f32 %v270_v24, %v269_v4  ;;  %v284_v33 = vrot.slane %v283_v9, 4 }
  0x4b   : > { %v399_v34 = vmul.f32 0.0, %v393_v10  ;;  %v400_v35 = vmul.f32 0.0, %v394_v22  ;;  %v401_v39 = vmul.f32 0.0, %v395_v27  ;;  %v278_v40 = vadd.f32 %v277_v32, %v276_v7 }
  0x4c   : > { %v346_v30 = vcombine.low %v338_v25, %v345_v26  ;;  %v265_v36 = vrot.slane %v264_v28, 2  ;;  %v272_v37 = vrot.slane %v271_v29, 2  ;;  %v285_v42 = vadd.f32 %v284_v33, %v283_v9 }
  0x4d   : > { %v279_v46 = vrot.slane %v278_v40, 2  ;;  %v406_v52 = vcombine.low %v398_v31, %v399_v34  ;;  %v407_v53 = vcombine.low %v400_v35, %v401_v39 }
  0x4e   : > { %v353_v38 = vrot.slane %v346_v30, %v956_v48  ;;  %v266_v43 = vadd.f32 %v265_v36, %v264_v28  ;;  %v273_v44 = vadd.f32 %v272_v37, %v271_v29  ;;  %v286_v47 = vrot.slane %v285_v42, 2 }
  0x50   : > { %v355_v45 = vadd.f32 %v353_v38, %v954_v41  ;;  %v267_v49 = vrot.slane %v266_v43, 1  ;;  %v274_v50 = vrot.slane %v273_v44, 1  ;;  %v280_v41 = vadd.f32 %v279_v46, %v278_v40 }
  0x51   : > { %v287_v51 = vadd.f32 %v286_v47, %v285_v42 }
  0x52   : > { %360 = vst.msk [vmem:[%s943_s30] sm:$0xf] %vm939_vm0, %v355_v45  ;;  %v268_v54 = vadd.f32 %v267_v49, %v266_v43  ;;  %v275_v55 = vadd.f32 %v274_v50, %v273_v44 }
  0x53   : > { %726 = shalt.err (!%p723_p6)
}
  0x54   : > { %s727_s20 = scalar_lea.hbm %s973_s7, 64  ;;  %s731_s28 = scalar_lea.hbm %s1064_s1, 128 }
  0x55   : > { %p728_p7 = scmp.ne.s32.totalorder %s973_s7, %s727_s20  ;;  %p732_p13 = scmp.lt.s32.totalorder %s973_s7, %s1064_s1 }
  0x56   : > { %p733_p1 = scmp.lt.s32.totalorder %s731_s28, %s727_s20 }
  0x57   : > { %p729_p10 = pnand %p728_p7, %p899_p9 }
  0x58   : > { %p734_p8 = por %p733_p1, %p732_p13 }
  0x59   : > { %p730_p4 = pneg %p729_p10 }
  0x5b   : > { %p735_p12 = pnand %p734_p8, %p730_p4 }
  0x5d   : > { %738 = shalt.err (!%p735_p12)
}
  0x5e   : > { %613 = dma.vmem_to_hbm [thread:$0]  (%p899_p9), %s975_s4, 64, %s973_s7, %s443_s8   ;;  %v281_v56 = vrot.slane %v280_v41, 1  ;;  %v288_v57 = vrot.slane %v287_v51, 1  ;;  %v366_v58 = vcombine.low %v268_v54, %v275_v55  ;;  %v414_v61 = vrot.slane %v406_v52, %v956_v48  ;;  %v361_v13 = vld [vmem:[%s948_s3] sm:$0xf] }
  0x5f   : > { %v421_v62 = vrot.slane %v407_v53, %v956_v48  ;;  %s476_s4 = sshll.u32 %s948_s3, 4  ;;  %s1018_s7 = scalar_lea.hbm %s1065_s2, %s609_s21  ;;  %s477_s4 = int_to_ptr.vmem [resolvable:$true] %s476_s4 }
  0x60   : > { %v282_v59 = vadd.f32 %v281_v56, %v280_v41  ;;  %v289_v60 = vadd.f32 %v288_v57, %v287_v51  ;;  %v374_v0 = vrot.slane %v366_v58, %v956_v48  ;;  %s448_s8 = scalar_lea.sflag [#allocation7], %s930_s25  ;;  %s739_s15 = scalar_lea.vmem %s477_s4, 64 }
  0x61   : > { %v422_v11 = vcombine.low %v414_v61, %v421_v62  ;;  %p740_p0 = scmp.ne.s32.totalorder %s477_s4, %s739_s15  ;;  %s832_s16 = smov [#allocation6]  }
  0x62   : > { %v367_v63 = vcombine.low %v282_v59, %v289_v60  ;;  %s743_s18 = sshll.u32 %s832_s16, 4  ;;  %s744_s18 = int_to_ptr.vmem [resolvable:$false] %s743_s18 }
  0x63   : > { %v429_v15 = vrot.slane %v422_v11, %v956_v48  ;;  %p741_p2 = pnand %p740_p0, %p899_p9  ;;  %s745_s12 = scalar_lea.vmem %s744_s18, 128 }
  0x64   : > { %v381_v2 = vrot.slane %v367_v63, %v956_v48  ;;  %p746_p5 = scmp.lt.s32.totalorder %s477_s4, %s744_s18  ;;  %p747_p6 = scmp.lt.s32.totalorder %s745_s12, %s739_s15 }
  0x65   : > { %p742_p3 = pneg %p741_p2 }
  0x66   : > { %v382_v12 = vcombine.low %v374_v0, %v381_v2  ;;  %p748_p7 = por %p747_p6, %p746_p5 }
  0x68   : > { %v389_v14 = vrot.slane %v382_v12, %v956_v48  ;;  %p749_p10 = pnand %p748_p7, %p742_p3 }
  0x6a   : > { %v391_v16 = vadd.f32 %v389_v14, %v361_v13 }
  0x6c   : > { %v431_v17 = vadd.f32 %v429_v15, %v391_v16 }
  0x6e   : > { %432 = vst.msk [vmem:[%s948_s3] sm:$0xf] %vm939_vm0, %v431_v17 }
  0x75   : > { %v436_v18 = vld [vmem:[%s948_s3] sm:$0xf] }
  0x76   : > { %v437_v19 = vmul.f32 0.06666667, %v436_v18 }
  0x78   : > { %683 = vrsqrt.f32 %v437_v19  ;;  %vm438_vm1 = vcmp.gt.f32.partialorder %v437_v19, 0.0 }
  0x85   : > { %v684_v20 = vpop.eup %683 }
  0x86   : > { %v440_v48 = vsel %vm438_vm1, %v684_v20, 1.0 }
  0x87   : > { %441 = vst.msk [vmem:[%s948_s3] sm:$0xf] %vm939_vm0, %v440_v48 }
  0x88   : > { %752 = shalt.err (!%p749_p10)
}
  0x89   : > { %s753_s3 = scalar_lea.hbm %s1018_s7, 64  ;;  %s757_s19 = scalar_lea.hbm %s1065_s2, 128 }
  0x8a   : > { %p754_p4 = scmp.ne.s32.totalorder %s1018_s7, %s753_s3  ;;  %p758_p8 = scmp.lt.s32.totalorder %s1018_s7, %s1065_s2 }
  0x8b   : > { %p759_p12 = scmp.lt.s32.totalorder %s757_s19, %s753_s3 }
  0x8c   : > { %p755_p13 = pnand %p754_p4, %p899_p9 }
  0x8d   : > { %p760_p0 = por %p759_p12, %p758_p8 }
  0x8e   : > { %p756_p1 = pneg %p755_p13 }
  0x90   : > { %p761_p2 = pnand %p760_p0, %p756_p1 }
  0x92   : > { %764 = shalt.err (!%p761_p2)
}
  0x93   : > { %614 = dma.vmem_to_hbm [thread:$0]  (%p899_p9), %s477_s4, 64, %s1018_s7, %s448_s8  }
  0x94 PF: > { %s488_s27 = sand.u32 1, %s803_s9   ;;  %p1073_p3 = scmp.ge.s32.totalorder %s823_s14, 2 }
  0x95   : > { %s489_s28 = scalar_lea.sflag [#allocation4], %s488_s27 }
  0x96   : > { %p622_p5 = pnand %p1073_p3, %p906_p11 }
  0x98   : > { %p623_p6 = pneg %p622_p5 }
  0x9a   : > { %794 = dma.done.wait (%p623_p6), %s489_s28, 64  }
  0x9b   : > { %796 = vsyncadd (%p623_p6), %s489_s28, 4294967232  ;;  %s498_s29 = scalar_lea.sflag [#allocation7], %s488_s27 }
  0x9c   : > { %798 = dma.done.wait (%p623_p6), %s498_s29, 64  }
  0x9d   : > { %800 = vsyncadd (%p623_p6), %s498_s29, 4294967232  ;;  %s22_s14 = sadd.s32 1, %s823_s14   ;;  %s1074_s9 = smov %s807_s10 }
  0x9e   : > { %p19_p7 = scmp.ge.s32.totalorder %s22_s14, 4   ;;  %s1075_s10 = smov %s811_s11 }
  0x9f   : > { %s1076_s11 = smov %s904_s23  ;;  %s1077_s12 = smov %s819_s13 }
  0xa0   : > { %s1078_s13 = smov %s1080_s17  ;;  %21 = sbr.rel (!%p19_p7) target bundleno = 8 (0x8), region = 94 }
  0xa5   :  { %503 = vsyncpa [#allocation3], 1 }
  0xa6   :  { %505 = vsyncpa [#allocation3 + $0x1], 1 }
  0xa7   :  { %506 = vsyncpa [#allocation4], 1 }
  0xa8   :  { %508 = vsyncpa [#allocation4 + $0x1], 1 }
  0xa9   :  { %509 = vsyncpa [#allocation7], 1 }
  0xaa   :  { %511 = vsyncpa [#allocation7 + $0x1], 1 }

</bundles_post_ra>
